<compile_context>
chip_gen: v7x
topology: tpu7x:2x2x1
jax: 0.10.0
libtpu: 0.0.40
codegen_flags: <defaults>
</compile_context>

<pallas_src>
import functools

import jax
import jax.numpy as jnp
from jax.experimental import pallas as pl
from jax.experimental.pallas import tpu as pltpu

LANE = 128                              # vreg lane width
TM_MAX = 2048                           # hard cap on rows per grid step
VMEM_BLOCK_BUDGET = 24 * 1024 * 1024    # target bytes for all pipelined blocks
VMEM_LIMIT_BYTES = 32 * 1024 * 1024     # scoped VMEM limit we request


def _rbf_kernel(x_ref, expand_ref, grid_ref, o_ref, *, neg_inv_sq, split_f32):
    # x_ref      : (TM, LANE)   input float dtype
    # expand_ref : (LANE, W)    bf16 0/1 gather matrix, W = LANE * num_grids
    # grid_ref   : (1, W)       f32 grid values tiled so col c -> grid[c % G]
    # o_ref      : (TM, W)      output dtype (input float dtype)
    #
    # Exact lane-expansion on the MXU: x_rep[:, c] == x[:, c // num_grids]
    # (each output column sums exactly one x * 1.0 term, rest are zeros).
    e = expand_ref[...]
    if split_f32:
        # hi/lo bf16 split of an f32 (or f16) input: two single-pass bf16
        # matmuls accumulated in f32.  Much cheaper than Precision.HIGHEST.
        x = x_ref[...].astype(jnp.float32)
        x_hi = x.astype(jnp.bfloat16)
        x_lo = (x - x_hi.astype(jnp.float32)).astype(jnp.bfloat16)
        x_rep = jnp.dot(x_hi, e, preferred_element_type=jnp.float32)
        x_rep = x_rep + jnp.dot(x_lo, e, preferred_element_type=jnp.float32)
    else:
        # bf16 input: a single bf16 pass is exact.
        x_rep = jnp.dot(x_ref[...], e, preferred_element_type=jnp.float32)

    d = x_rep - grid_ref[...]
    o_ref[...] = jnp.exp(d * d * neg_inv_sq).astype(o_ref.dtype)


def _choose_tm(n, rows, tm_cap):
    """Rows per grid step: multiple of 8, <= tm_cap.

    Prefers an exact divisor of `rows` when the element count is lane-exact
    (no padded-tail output copy) and >= 2 grid steps (v7x has 2 TensorCores
    sharded over the "parallel" axis)."""
    tm_cap = max(8, min(tm_cap, -(-rows // 8) * 8))
    if n % LANE == 0 and rows % 8 == 0:
        best = 8
        d = 8
        limit = min(tm_cap, rows)
        while d <= limit:
            if rows % d == 0:
                best = d
            d += 8
        # Only take the exact-fit path if it does not shrink the step size too
        # much (tiny steps -> per-step overhead dominates the saved copy).
        if 4 * best >= limit:
            tm = best
            if rows // tm < 2 and rows >= 16:       # split work for 2 TCs
                d = tm - 8
                while d >= 8:
                    if rows % d == 0 and rows // d >= 2:
                        tm = d
                        break
                    d -= 8
            return tm
    # Ragged path: rows will be padded up to a multiple of tm.
    tm = tm_cap
    if rows > 8 and -(-rows // tm) < 2:
        tm = max(8, ((-(-rows // 2)) + 7) // 8 * 8)
    return tm


def radial_basis_function(x, *, grid_min=-2.0, grid_max=2.0, num_grids=8,
                          denominator=None):
    """JAX/Pallas equivalent of RadialBasisFunction.forward."""
    if num_grids < 1:
        raise ValueError("num_grids must be >= 1")
    # Match PyTorch's `denominator or (...)` semantics (0.0/None -> default).
    if not denominator:
        if num_grids == 1:
            raise ValueError(
                "num_grids == 1 requires an explicit nonzero denominator")
        denominator = (grid_max - grid_min) / (num_grids - 1)
    inv_denominator = 1.0 / float(denominator)
    neg_inv_sq = -(inv_denominator * inv_denominator)

    orig_shape = x.shape
    # PyTorch promotes integer inputs to float; keep float inputs as-is
    # (bf16 stays bf16 end-to-end so the dominant output store is halved).
    xc = x if jnp.issubdtype(x.dtype, jnp.floating) else x.astype(jnp.float32)
    out_dtype = xc.dtype
    split_f32 = (xc.dtype != jnp.bfloat16)

    W = LANE * num_grids
    n = int(xc.size)
    rows = -(-n // LANE)                            # ceil

    in_sz = jnp.dtype(xc.dtype).itemsize
    out_sz = jnp.dtype(out_dtype).itemsize
    # Double-buffered block bytes per row (x tile + output tile) plus the
    # resident operands (bf16 gather matrix + tiled grid row).
    per_row = 2 * (LANE * in_sz + W * out_sz)
    operand_bytes = 2 * LANE * W * 2 + 2 * 8 * W * 4
    tm_cap = max(8, min(TM_MAX,
                        (VMEM_BLOCK_BUDGET - operand_bytes) // per_row // 8 * 8))
    tm = _choose_tm(n, rows, tm_cap)
    rows_padded = -(-rows // tm) * tm
    n_pad = rows_padded * LANE - n

    xf = xc.reshape(-1)
    if n_pad:                                       # lane-exact shapes skip it
        xf = jnp.pad(xf, (0, n_pad))
    x2d = xf.reshape(rows_padded, LANE)

    # Constant operands (built once at trace time, resident in VMEM).
    grid_vals = jnp.linspace(grid_min, grid_max, num_grids, dtype=jnp.float32)
    grid_row = jnp.tile(grid_vals, LANE).reshape(1, W)            # grid[c % G]
    lane_idx = jnp.arange(LANE, dtype=jnp.int32)[:, None]
    col_idx = jnp.arange(W, dtype=jnp.int32)[None, :]
    expand = (lane_idx == col_idx // num_grids).astype(jnp.bfloat16)  # (LANE,W)

    kernel = functools.partial(_rbf_kernel, neg_inv_sq=neg_inv_sq,
                               split_f32=split_f32)

    n_passes = 2 if split_f32 else 1
    out_bytes = rows_padded * W * out_sz
    cost = pl.CostEstimate(
        flops=int(2 * rows_padded * LANE * W * n_passes + 3 * rows_padded * W),
        transcendentals=int(rows_padded * W),
        bytes_accessed=int(x2d.size * in_sz + expand.size * 2
                           + grid_row.size * 4 + out_bytes),
    )

    out2d = pl.pallas_call(
        kernel,
        out_shape=jax.ShapeDtypeStruct((rows_padded, W), out_dtype),
        grid_spec=pltpu.PrefetchScalarGridSpec(
            num_scalar_prefetch=0,
            grid=(rows_padded // tm,),
            in_specs=[
                pl.BlockSpec((tm, LANE), lambda i: (i, 0)),   # x rows
                pl.BlockSpec((LANE, W), lambda i: (0, 0)),    # bf16 gather mat
                pl.BlockSpec((1, W), lambda i: (0, 0)),       # tiled grid row
            ],
            out_specs=pl.BlockSpec((tm, W), lambda i: (i, 0)),
        ),
        compiler_params=pltpu.CompilerParams(
            dimension_semantics=("parallel",),
            vmem_limit_bytes=VMEM_LIMIT_BYTES),
        cost_estimate=cost,
    )(x2d, expand, grid_row)

    if n_pad:                                       # only copy when we padded
        out = out2d.reshape(-1, num_grids)[:n]
        return out.reshape(*orig_shape, num_grids)
    return out2d.reshape(*orig_shape, num_grids)    # metadata-only reshape


if __name__ == "__main__":
    key = jax.random.PRNGKey(0)
    num_grids = 8
    grid = jnp.linspace(-2.0, 2.0, num_grids, dtype=jnp.float32)
    denom = (2.0 - (-2.0)) / (num_grids - 1)

    # f32, lane-exact shape (exercises the no-pad / no-slice fast path and
    # the hi/lo two-pass MXU gather)
    x = jax.random.normal(key, (2, 4, 16, 16), dtype=jnp.float32)
    y = jax.block_until_ready(radial_basis_function(x))
    y_ref = jnp.exp(-(((x[..., None] - grid) / denom) ** 2))
    assert y.shape == (2, 4, 16, 16, num_grids), y.shape
    assert jnp.allclose(y, y_ref, atol=1e-4, rtol=1e-4), \
        float(jnp.max(jnp.abs(y - y_ref)))

    # odd shape that exercises the guarded padded-tail path
    x2 = jax.random.normal(jax.random.PRNGKey(1), (3, 5, 7), dtype=jnp.float32)
    y2 = jax.block_until_ready(radial_basis_function(x2))
    y2_ref = jnp.exp(-(((x2[..., None] - grid) / denom) ** 2))
    assert y2.shape == (3, 5, 7, num_grids), y2.shape
    assert jnp.allclose(y2, y2_ref, atol=1e-4, rtol=1e-4), \
        float(jnp.max(jnp.abs(y2 - y2_ref)))

    # bf16 input (exercises the single-pass bf16 MXU gather, bf16 output)
    xb = x.astype(jnp.bfloat16)
    yb = jax.block_until_ready(radial_basis_function(xb))
    yb_ref = jnp.exp(-(((xb.astype(jnp.float32)[..., None] - grid) / denom) ** 2))
    assert yb.dtype == jnp.bfloat16 and yb.shape == (2, 4, 16, 16, num_grids)
    assert jnp.allclose(yb.astype(jnp.float32), yb_ref, atol=2e-2, rtol=2e-2), \
        float(jnp.max(jnp.abs(yb.astype(jnp.float32) - yb_ref)))

    print("KERNEL_OK")
</pallas_src>

<mosaic_0001>
module attributes {stable_mosaic.version = 11 : i64} {
  func.func @_rbf_kernel(%arg0: i32, %arg1: memref<8x128xf32, #tpu.memory_space<vmem>>, %arg2: memref<128x1024xbf16, #tpu.memory_space<vmem>>, %arg3: memref<1x1024xf32, #tpu.memory_space<vmem>>, %arg4: memref<8x1024xf32, #tpu.memory_space<vmem>>) attributes {dimension_semantics = [#tpu.dimension_semantics<parallel>], iteration_bounds = array<i64: 2>, scalar_prefetch = 0 : i64, scratch_operands = 0 : i64, tpu.core_type = #tpu.core_type<tc>, window_params = [{transform_indices = @transform_0, window_bounds = array<i64: 8, 128>}, {pipeline_mode = #tpu.pipeline_mode<synchronous>, transform_indices = @transform_1, window_bounds = array<i64: 128, 1024>}, {pipeline_mode = #tpu.pipeline_mode<synchronous>, transform_indices = @transform_2, window_bounds = array<i64: 1, 1024>}, {transform_indices = @transform_3, window_bounds = array<i64: 8, 1024>}]} {
    %c0 = arith.constant 0 : index
    %c0_0 = arith.constant 0 : index
    %0 = vector.load %arg2[%c0, %c0_0] : memref<128x1024xbf16, #tpu.memory_space<vmem>>, vector<128x1024xbf16>
    %c0_1 = arith.constant 0 : index
    %c0_2 = arith.constant 0 : index
    %1 = vector.load %arg1[%c0_1, %c0_2] : memref<8x128xf32, #tpu.memory_space<vmem>>, vector<8x128xf32>
    %2 = arith.truncf %1 : vector<8x128xf32> to vector<8x128xbf16>
    %3 = arith.extf %2 : vector<8x128xbf16> to vector<8x128xf32>
    %4 = arith.subf %1, %3 : vector<8x128xf32>
    %5 = arith.truncf %4 : vector<8x128xf32> to vector<8x128xbf16>
    %cst = arith.constant dense<0.000000e+00> : vector<8x1024xf32>
    %6 = tpu.matmul %2, %0, %cst {dimension_numbers = #tpu.dot_dimension_numbers<[1], [0], [0], [1], [0, 0, 1, 1], [], []>} : vector<8x128xbf16>, vector<128x1024xbf16>, vector<8x1024xf32> -> vector<8x1024xf32>
    %cst_3 = arith.constant dense<0.000000e+00> : vector<8x1024xf32>
    %7 = tpu.matmul %5, %0, %cst_3 {dimension_numbers = #tpu.dot_dimension_numbers<[1], [0], [0], [1], [0, 0, 1, 1], [], []>} : vector<8x128xbf16>, vector<128x1024xbf16>, vector<8x1024xf32> -> vector<8x1024xf32>
    %8 = arith.addf %6, %7 : vector<8x1024xf32>
    %c0_4 = arith.constant 0 : index
    %c0_5 = arith.constant 0 : index
    %9 = vector.load %arg3[%c0_4, %c0_5] : memref<1x1024xf32, #tpu.memory_space<vmem>>, vector<1x1024xf32>
    %10 = vector.broadcast %9 : vector<1x1024xf32> to vector<8x1024xf32>
    %11 = arith.subf %8, %10 : vector<8x1024xf32>
    %12 = arith.mulf %11, %11 : vector<8x1024xf32>
    %cst_6 = arith.constant -3.062500e+00 : f32
    %13 = vector.broadcast %cst_6 : f32 to vector<8x1024xf32>
    %14 = arith.mulf %12, %13 : vector<8x1024xf32>
    %15 = math.exp %14 : vector<8x1024xf32>
    %c0_7 = arith.constant 0 : index
    %c0_8 = arith.constant 0 : index
    %16 = vector.load %arg4[%c0_7, %c0_8] : memref<8x1024xf32, #tpu.memory_space<vmem>>, vector<8x1024xf32>
    tpu.vector_store %arg4[%c0_7, %c0_8], %15 {strides = array<i32>} : memref<8x1024xf32, #tpu.memory_space<vmem>>, vector<8x1024xf32>,
    return
  }
  func.func @transform_0(%arg0: i32) -> (i32, i32) {
    %c0_i32 = arith.constant 0 : i32
    %c0_i32_0 = arith.constant 0 : i32
    return %arg0, %c0_i32 : i32, i32
  }
  func.func @transform_1(%arg0: i32) -> (i32, i32) {
    %c0_i32 = arith.constant 0 : i32
    %c0_i32_0 = arith.constant 0 : i32
    %c0_i32_1 = arith.constant 0 : i32
    return %c0_i32, %c0_i32_0 : i32, i32
  }
  func.func @transform_2(%arg0: i32) -> (i32, i32) {
    %c0_i32 = arith.constant 0 : i32
    %c0_i32_0 = arith.constant 0 : i32
    %c0_i32_1 = arith.constant 0 : i32
    return %c0_i32, %c0_i32_0 : i32, i32
  }
  func.func @transform_3(%arg0: i32) -> (i32, i32) {
    %c0_i32 = arith.constant 0 : i32
    %c0_i32_0 = arith.constant 0 : i32
    return %arg0, %c0_i32 : i32, i32
  }
}

</mosaic_0001>

<bundles_post_ra>
// kernel: tpu_custom_call.1
= control target key start
LH: loop header
LB: loop body
LE: loop exit
PB: predicated region body
PF: predicated region fallthrough
CT: control target
= control target key end

     0   :  { %8 = vsyncpa [#allocation3], 0  ;;  %s2015_s0 = inlined_call_operand.hbm [shape: f32[16,128], index: 0, kind: input, shape index: {}]   ;;  %s2016_s1 = inlined_call_operand.hbm [shape: bf16[128,1024], index: 1, kind: input, shape index: {}]   ;;  %s2017_s2 = inlined_call_operand.hbm [shape: f32[1,1024], index: 2, kind: input, shape index: {}]   ;;  %s2018_s3 = inlined_call_operand.hbm [shape: f32[16,1024], index: 3, kind: output, shape index: {}]  }
   0x1   :  { %10 = vsyncpa [#allocation3 + $0x1], 0 }
   0x2   :  { %11 = vsyncpa [#allocation6], 0 }
   0x3   :  { %12 = vsyncpa [#allocation4], 0 }
   0x4   :  { %14 = vsyncpa [#allocation4 + $0x1], 0  ;;  %s1494_s12 = smov 0   ;;  %s1496_s13 = smov 0  }
   0x5   :  { %s1498_s14 = smov 0   ;;  %s1500_s15 = smov 0  }
   0x6 LB: > { %s1515_s16 = sadd.s32 4294967295, %s1465_s15   ;;  %s1125_s17 = sadd.s32 4294967294, %s1465_s15   ;;  %s1465_s15 = sphi %s1500_s15, %s2068_s15   ;;  %s1461_s14 = sphi %s1498_s14, %s2067_s14   ;;  %s1457_s13 = sphi %s1496_s13, %s2066_s13   ;;  %s1453_s12 = sphi %s1494_s12, %s2065_s12  }
   0x7   : > { %p40_p0 = scmp.ne.s32.totalorder %s1457_s13, %s1453_s12  ;;  %p2019_p1 = scmp.eq.s32.totalorder %s1515_s16, 0 }
   0x8   : > { %p112_p3 = scmp.eq.s32.totalorder %s1125_s17, 1  ;;  %p1126_p5 = scmp.ge.s32.totalorder %s1465_s15, 1 }
   0x9   : > { %p1524_p4 = por %p2019_p1, %p40_p0  ;;  %p119_p7 = scmp.lt.s32.totalorder %s1465_s15, 3 }
   0xa   : > { %p1529_p6 = por %p112_p3, %p40_p0  ;;  %s1467_s21 = smov [#allocation5]  }
   0xb   : > { %s2033_s18 = scalar_select %p1524_p4, 1, 0 }
   0xc   : > { %s2034_s19 = scalar_select %p1529_p6, 1, 0 }
   0xd   : > { %p1534_p8 = pnand %p1126_p5, %p119_p7  ;;  %s131_s22 = sshll.u32 %s1467_s21, 4  ;;  %s1538_s22 = int_to_ptr.vmem [resolvable:$true] %s131_s22 }
   0xe   : > { %s1468_s24 = smov [#allocation7]   ;;  %s1309_s28 = scalar_lea.hbm %s2016_s1, 8192 }
   0xf   : > { %p1235_p9 = pneg %p1534_p8  ;;  %s145_s25 = sshll.u32 %s1468_s24, 4  ;;  %s1549_s25 = int_to_ptr.vmem [resolvable:$true] %s145_s25 }
  0x10   : > { %p1310_p12 = scmp.ne.s32.totalorder %s2016_s1, %s1309_s28  ;;  %p1316_p5 = scmp.lt.u32.totalorder %s1309_s28, %s2016_s1 }
  0x11   : > { %p1545_p11 = pnand %p1235_p9, %p2019_p1 }
  0x13   : > { %p1311_p13 = pneg %p1545_p11 }
  0x15   : > { %p1312_p0 = pnand %p1311_p13, %p1310_p12 }
  0x17   : > { %p1313_p3 = pneg %p1312_p0 }
  0x19   : > { %p1318_p7 = pnand %p1316_p5, %p1313_p3 }
  0x1b   : > { %1321 = shalt.err (!%p1318_p7)
}
  0x1c   : > { %s1322_s6 = scalar_lea.vmem %s1538_s22, 8192  ;;  %p1330_p2 = scmp.lt.s32.totalorder %s1538_s22, %s1538_s22 }
  0x1d   : > { %p1323_p9 = scmp.ne.s32.totalorder %s1538_s22, %s1322_s6  ;;  %p1331_p12 = scmp.lt.s32.totalorder %s1322_s6, %s1322_s6 }
  0x1f   : > { %p1325_p10 = pnand %p1323_p9, %p1311_p13  ;;  %p1332_p0 = por %p1331_p12, %p1330_p2 }
  0x21   : > { %p1326_p1 = pneg %p1325_p10 }
  0x23   : > { %p1333_p6 = pnand %p1332_p0, %p1326_p1 }
  0x25   : > { %1336 = shalt.err (!%p1333_p6)
}
  0x26   : > { %s1469_s7 = smov 512   ;;  %s1470_s8 = smov 32  }
  0x27   : > { %1238 = dma.hbm_to_vmem [thread:$0]  (!%p1545_p11), %s2016_s1, 8192, %s1538_s22, [#allocation6], %s1469_s7, %s1469_s7, %s1470_s8  }
  0x28   : > { %s1337_s21 = scalar_lea.hbm %s2017_s2, 128 }
  0x29   : > { %p1338_p2 = scmp.ne.s32.totalorder %s2017_s2, %s1337_s21  ;;  %p1344_p10 = scmp.lt.u32.totalorder %s1337_s21, %s2017_s2 }
  0x2b   : > { %p1340_p1 = pnand %p1338_p2, %p1311_p13 }
  0x2d   : > { %p1341_p6 = pneg %p1340_p1 }
  0x2f   : > { %p1346_p3 = pnand %p1344_p10, %p1341_p6 }
  0x31   : > { %1349 = shalt.err (!%p1346_p3)
}
  0x32   : > { %s1350_s22 = scalar_lea.vmem %s1549_s25, 128  ;;  %p1358_p12 = scmp.lt.s32.totalorder %s1549_s25, %s1549_s25 }
  0x33   : > { %p1351_p5 = scmp.ne.s32.totalorder %s1549_s25, %s1350_s22  ;;  %p1359_p0 = scmp.lt.s32.totalorder %s1350_s22, %s1350_s22 }
  0x35   : > { %p1353_p7 = pnand %p1351_p5, %p1311_p13  ;;  %p1360_p2 = por %p1359_p0, %p1358_p12 }
  0x37   : > { %p1354_p9 = pneg %p1353_p7 }
  0x39   : > { %p1361_p1 = pnand %p1360_p2, %p1354_p9 }
  0x3b   : > { %1364 = shalt.err (!%p1361_p1)
}
  0x3c   : > { %1241 = dma.hbm_to_vmem [thread:$0]  (!%p1545_p11), %s2017_s2, 128, %s1549_s25, [#allocation6]  }
  0x3d   : > { %s1604_s4 = sadd.s32 1, %s1465_s15   ;;  %s27_s23 = sadd.s32 1, %s1461_s14 }
  0x3e   : > { %s24_s5 = ssub.s32 %s1465_s15, %s1604_s4  ;;  %p34_p13 = scmp.ne.s32.totalorder %s1461_s14, %s1457_s13 }
  0x3f   : > { %p25_p6 = scmp.eq.s32.totalorder %s24_s5, 0  ;;  %p35_p10 = scmp.eq.s32.totalorder %s1465_s15, 0 }
  0x40   : > { %p2037_p3 = scmp.eq.s32.totalorder %s1515_s16, 1  ;;  %p1252_p7 = scmp.lt.s32.totalorder %s1465_s15, 2 }
  0x41   : > { %s1620_s7 = scalar_select %p25_p6, %s1461_s14, %s27_s23  }
  0x42   : > { %p1614_p5 = por %p2037_p3, %p34_p13  ;;  %p36_p9 = por %p35_p10, %p34_p13 }
  0x43   : > { %s156_s8 = sand.u32 1, %s1461_s14   ;;  %s1131_s25 = sshll.u32 %s1465_s15, 7 }
  0x44   : > { %s2038_s6 = scalar_select %p1614_p5, 1, 0 }
  0x45   : > { %s1130_s9 = sshll.u32 %s156_s8, 3  ;;  %s1627_s17 = scalar_lea.hbm %s2015_s0, %s1131_s25 }
  0x46   : > { %s160_s21 = scalar_lea.vmem [#allocation2], %s1130_s9  ;;  %p1631_p11 = pnand %p1252_p7, %p36_p9 }
  0x47   : > { %s167_s24 = sshll.u32 %s160_s21, 4  ;;  %s157_s27 = scalar_lea.sflag [#allocation3], %s156_s8  ;;  %s1629_s24 = int_to_ptr.vmem [resolvable:$true] %s167_s24 }
  0x48   : > { %s1365_s28 = scalar_lea.hbm %s1627_s17, 128  ;;  %p1367_p0 = pneg %p1631_p11 }
  0x49   : > { %p1366_p12 = scmp.ne.s32.totalorder %s1627_s17, %s1365_s28  ;;  %s1370_s30 = scalar_lea.hbm %s2015_s0, 256 }
  0x4a   : > { %p1371_p13 = scmp.lt.u32.totalorder %s1627_s17, %s2015_s0  ;;  %p1372_p6 = scmp.lt.u32.totalorder %s1370_s30, %s1365_s28 }
  0x4b   : > { %p1368_p2 = pnand %p1367_p0, %p1366_p12  ;;  %p1374_p3 = scmp.lt.u32.totalorder %s1365_s28, %s1627_s17 }
  0x4c   : > { %p1373_p10 = por %p1372_p6, %p1371_p13 }
  0x4d   : > { %p1369_p1 = pneg %p1368_p2 }
  0x4e   : > { %p1375_p7 = por %p1374_p3, %p1373_p10 }
  0x50   : > { %p1376_p9 = pnand %p1375_p7, %p1369_p1 }
  0x52   : > { %1379 = shalt.err (!%p1376_p9)
}
  0x53   : > { %s1380_s8 = scalar_lea.vmem %s1629_s24, 128  ;;  %s1471_s9 = smov [#allocation2]  }
  0x54   : > { %p1381_p12 = scmp.ne.s32.totalorder %s1629_s24, %s1380_s8  ;;  %s1385_s25 = sshll.u32 %s1471_s9, 4  ;;  %s1386_s25 = int_to_ptr.vmem [resolvable:$false] %s1385_s25 }
  0x55   : > { %s1387_s10 = scalar_lea.vmem %s1386_s25, 256  ;;  %p1388_p4 = scmp.lt.s32.totalorder %s1629_s24, %s1386_s25 }
  0x56   : > { %p1383_p2 = pnand %p1381_p12, %p1367_p0  ;;  %p1389_p13 = scmp.lt.s32.totalorder %s1387_s10, %s1380_s8 }
  0x58   : > { %p1384_p5 = pneg %p1383_p2  ;;  %p1390_p6 = por %p1389_p13, %p1388_p4 }
  0x5a   : > { %p1391_p10 = pnand %p1390_p6, %p1384_p5 }
  0x5c   : > { %1394 = shalt.err (!%p1391_p10)
}
  0x5d   : > { %1245 = dma.hbm_to_vmem [thread:$0]  (!%p1631_p11), %s1627_s17, 128, %s1629_s24, %s157_s27  }
  0x5e   : > { %176 = sbr.rel (%p1534_p8) target bundleno = 488 (0x1e8), region = 32 }
  0x65   : > { %s1663_s11 = sand.u32 1, %s1457_s13   ;;  %p2040_p4 = scmp.ne.s32.totalorder %s2033_s18, 0 }
  0x66   : > { %s1133_s21 = sshll.u32 %s1663_s11, 3  ;;  %s179_s28 = scalar_lea.sflag [#allocation3], %s1663_s11 }
  0x67   : > { %s1667_s22 = scalar_lea.vmem [#allocation2], %s1133_s21 }
  0x68   : > { %1440 = dma.done.wait (%p2040_p4), %s179_s28, 128  }
  0x69   : > { %1442 = vsyncadd (%p2040_p4), %s179_s28, 4294967168  ;;  %p2041_p5 = scmp.eq.s32.totalorder %s1515_s16, 0 }
  0x6b   : > { %1444 = dma.done.wait (%p2041_p5), [#allocation6], 8320   ;;  %p2042_p8 = pmov %p2041_p5 }
  0x6c   : > { %v2022_v0 = vmov 0   ;;  %v214_v1 = vld [vmem:[#allocation5] sm:$0xff]  ;;  %v215_v3 = vld [vmem:[#allocation5 + $0x8] sm:$0xff]  ;;  %v278_v44 = vld [vmem:[%s1667_s22] sm:$0xff]  ;;  %s1136_s18 = sshll.u32 %s1663_s11, 6  ;;  %s1206_s17 = sshll.u32 %s1515_s16, 10 }
  0x6d   : > { %1446 = vsyncadd (%p2042_p8), [#allocation6], 4294958976  ;;  %635 = vmatprep.mubr.bf16.mxu0 %v2022_v0  ;;  %676 = vmatprep.mubr.bf16.mxu1 %v2022_v0  ;;  %v218_v2 = vld [vmem:[#allocation5 + $0x20] sm:$0xff]  ;;  %v219_v5 = vld [vmem:[#allocation5 + $0x28] sm:$0xff]  ;;  %v1742_v52 = vpack.c.bf16 %v278_v44, %v278_v44  ;;  %s1956_s20 = scalar_lea.vmem [#allocation8], %s1136_s18  ;;  %s1969_s29 = scalar_lea.hbm %s2018_s3, %s1206_s17 }
  0x6e   : > { %v1679_v4 = vcombine.high %v214_v1, %v218_v2  ;;  %v1681_v6 = vcombine.low %v214_v1, %v218_v2  ;;  %v222_v7 = vld [vmem:[#allocation5 + $0x40] sm:$0xff]  ;;  %v1683_v9 = vcombine.high %v215_v3, %v219_v5  ;;  %v1685_v10 = vcombine.low %v215_v3, %v219_v5  ;;  %v223_v12 = vld [vmem:[#allocation5 + $0x48] sm:$0xff]  ;;  %v216_v3 = vld [vmem:[#allocation5 + $0x10] sm:$0xff]  ;;  %s1036_s24 = sshll.u32 %s1956_s20, 4  ;;  %s1022_s16 = scalar_lea.sflag [#allocation4], %s1663_s11  ;;  %s1971_s24 = int_to_ptr.vmem [resolvable:$true] %s1036_s24 }
  0x6f   : > { %v226_v8 = vld [vmem:[#allocation5 + $0x60] sm:$0xff]  ;;  %v227_v13 = vld [vmem:[#allocation5 + $0x68] sm:$0xff]  ;;  %v280_v61 = vunpack.c.l.bf16 %v1742_v52  ;;  %v220_v5 = vld [vmem:[#allocation5 + $0x30] sm:$0xff]  ;;  %s1395_s30 = scalar_lea.vmem %s1971_s24, 1024  ;;  %p2062_p0 = scmp.ne.s32.totalorder %s2038_s6, 0 }
  0x70   : > { %v1687_v11 = vcombine.high %v222_v7, %v226_v8  ;;  %v230_v14 = vld [vmem:[#allocation5 + $0x80] sm:$0xff]  ;;  %603 = vmatprep.subr.bf16.mxu0 %v1679_v4  ;;  %v1690_v15 = vcombine.high %v223_v12, %v227_v13  ;;  %v231_v17 = vld [vmem:[#allocation5 + $0x88] sm:$0xff]  ;;  %644 = vmatprep.subr.bf16.mxu1 %v1683_v9  ;;  %v1694_v19 = vcombine.low %v222_v7, %v226_v8  ;;  %v217_v7 = vld [vmem:[#allocation5 + $0x18] sm:$0xff]  ;;  %p1396_p11 = scmp.ne.s32.totalorder %s1971_s24, %s1395_s30  ;;  %s1473_s23 = smov [#allocation8]  }
  0x71   : > { %v234_v16 = vld [vmem:[#allocation5 + $0xa0] sm:$0xff]  ;;  %v235_v18 = vld [vmem:[#allocation5 + $0xa8] sm:$0xff]  ;;  %604 = vmatpush1.bf16.msra.mxu0 %v1681_v6  ;;  %645 = vmatpush1.bf16.msra.mxu1 %v1685_v10  ;;  %v1698_v20 = vcombine.low %v223_v12, %v227_v13  ;;  %v221_v8 = vld [vmem:[#allocation5 + $0x38] sm:$0xff]  ;;  %v281_v12 = vsub.f32 %v278_v44, %v280_v61  ;;  %s1399_s5 = sshll.u32 %s1473_s23, 4  ;;  %s1400_s5 = int_to_ptr.vmem [resolvable:$false] %s1399_s5 }
  0x72   : > { %605 = vmatprep.subr.bf16.mxu0 %v1687_v11  ;;  %v1700_v21 = vcombine.high %v230_v14, %v234_v16  ;;  %646 = vmatprep.subr.bf16.mxu1 %v1690_v15  ;;  %v1703_v22 = vcombine.high %v231_v17, %v235_v18  ;;  %v238_v23 = vld [vmem:[#allocation5 + $0xc0] sm:$0xff]  ;;  %v239_v25 = vld [vmem:[#allocation5 + $0xc8] sm:$0xff]  ;;  %v1706_v27 = vcombine.low %v230_v14, %v234_v16  ;;  %p1397_p1 = pnand %p1396_p11, %p2062_p0  ;;  %s1401_s8 = scalar_lea.vmem %s1400_s5, 2048 }
  0x73   : > { %v242_v24 = vld [vmem:[#allocation5 + $0xe0] sm:$0xff]  ;;  %v243_v26 = vld [vmem:[#allocation5 + $0xe8] sm:$0xff]  ;;  %v1710_v28 = vcombine.low %v231_v17, %v235_v18  ;;  %v1776_v16 = vcombine.high %v216_v3, %v220_v5  ;;  %v1779_v17 = vcombine.high %v217_v7, %v221_v8  ;;  %v224_v18 = vld [vmem:[#allocation5 + $0x50] sm:$0xff]  ;;  %p1402_p7 = scmp.lt.s32.totalorder %s1971_s24, %s1400_s5  ;;  %p1403_p9 = scmp.lt.s32.totalorder %s1401_s8, %s1395_s30 }
  0x74   : > { %v1712_v29 = vcombine.high %v238_v23, %v242_v24  ;;  %v1715_v30 = vcombine.high %v239_v25, %v243_v26  ;;  %v246_v31 = vld [vmem:[#allocation5 + $0x100] sm:$0xff]  ;;  %v247_v33 = vld [vmem:[#allocation5 + $0x108] sm:$0xff]  ;;  %v1718_v35 = vcombine.low %v238_v23, %v242_v24  ;;  %v1722_v36 = vcombine.low %v239_v25, %v243_v26  ;;  %v228_v23 = vld [vmem:[#allocation5 + $0x70] sm:$0xff]  ;;  %p1398_p3 = pneg %p1397_p1 }
  0x75   : > { %606 = vmatpush1.bf16.msra.mxu0 %v1694_v19  ;;  %647 = vmatpush1.bf16.msra.mxu1 %v1698_v20  ;;  %v250_v32 = vld [vmem:[#allocation5 + $0x120] sm:$0xff]  ;;  %v251_v34 = vld [vmem:[#allocation5 + $0x128] sm:$0xff]  ;;  %v1781_v24 = vpack.c.bf16 %v281_v12, %v281_v12  ;;  %v225_v25 = vld [vmem:[#allocation5 + $0x58] sm:$0xff]  ;;  %v1798_v44 = vcombine.low %v224_v18, %v228_v23  ;;  %p1404_p12 = por %p1403_p9, %p1402_p7 }
  0x76   : > { %607 = vmatprep.subr.bf16.mxu0 %v1700_v21  ;;  %648 = vmatprep.subr.bf16.mxu1 %v1703_v22  ;;  %v1724_v37 = vcombine.high %v246_v31, %v250_v32  ;;  %v1727_v38 = vcombine.high %v247_v33, %v251_v34  ;;  %v254_v39 = vld [vmem:[#allocation5 + $0x140] sm:$0xff]  ;;  %v255_v41 = vld [vmem:[#allocation5 + $0x148] sm:$0xff]  ;;  %v1730_v43 = vcombine.low %v246_v31, %v250_v32  ;;  %v229_v26 = vld [vmem:[#allocation5 + $0x78] sm:$0xff] }
  0x77   : > { %v258_v40 = vld [vmem:[#allocation5 + $0x160] sm:$0xff]  ;;  %v259_v42 = vld [vmem:[#allocation5 + $0x168] sm:$0xff]  ;;  %v1735_v45 = vcombine.low %v247_v33, %v251_v34  ;;  %v1784_v31 = vcombine.low %v216_v3, %v220_v5  ;;  %v1788_v32 = vcombine.low %v217_v7, %v221_v8  ;;  %v1790_v33 = vcombine.high %v224_v18, %v228_v23  ;;  %v248_v7 = vld [vmem:[#allocation5 + $0x110] sm:$0xff]  ;;  %p1405_p2 = pnand %p1404_p12, %p1398_p3 }
  0x78   : > { %v1737_v46 = vcombine.high %v254_v39, %v258_v40  ;;  %v1740_v47 = vcombine.high %v255_v41, %v259_v42  ;;  %v262_v48 = vld [vmem:[#allocation5 + $0x180] sm:$0xff]  ;;  %v263_v50 = vld [vmem:[#allocation5 + $0x188] sm:$0xff]  ;;  %v1745_v53 = vcombine.low %v254_v39, %v258_v40  ;;  %v1749_v54 = vcombine.low %v255_v41, %v259_v42  ;;  %v232_v39 = vld [vmem:[#allocation5 + $0x90] sm:$0xff] }
  0x79   : > { %608 = vmatpush1.bf16.msra.mxu0 %v1706_v27  ;;  %649 = vmatpush1.bf16.msra.mxu1 %v1710_v28  ;;  %v266_v49 = vld [vmem:[#allocation5 + $0x1a0] sm:$0xff]  ;;  %v267_v51 = vld [vmem:[#allocation5 + $0x1a8] sm:$0xff]  ;;  %v1793_v34 = vcombine.high %v225_v25, %v229_v26  ;;  %v236_v40 = vld [vmem:[#allocation5 + $0xb0] sm:$0xff] }
  0x7a   : > { %609 = vmatprep.subr.bf16.mxu0 %v1712_v29  ;;  %650 = vmatprep.subr.bf16.mxu1 %v1715_v30  ;;  %v1751_v55 = vcombine.high %v262_v48, %v266_v49  ;;  %v1754_v56 = vcombine.high %v263_v50, %v267_v51  ;;  %v270_v57 = vld [vmem:[#allocation5 + $0x1c0] sm:$0xff]  ;;  %v271_v59 = vld [vmem:[#allocation5 + $0x1c8] sm:$0xff]  ;;  %v1758_v62 = vcombine.low %v262_v48, %v266_v49  ;;  %v233_v41 = vld [vmem:[#allocation5 + $0x98] sm:$0xff] }
  0x7b   : > { %v274_v58 = vld [vmem:[#allocation5 + $0x1e0] sm:$0xff]  ;;  %v275_v60 = vld [vmem:[#allocation5 + $0x1e8] sm:$0xff]  ;;  %v1762_v63 = vcombine.low %v263_v50, %v267_v51  ;;  %v237_v42 = vld [vmem:[#allocation5 + $0xb8] sm:$0xff]  ;;  %v1802_v48 = vcombine.low %v225_v25, %v229_v26  ;;  %v1804_v49 = vcombine.high %v232_v39, %v236_v40 }
  0x7c   : > { %v1764_v1 = vcombine.high %v270_v57, %v274_v58  ;;  %v1767_v2 = vcombine.high %v271_v59, %v275_v60  ;;  %v1770_v13 = vcombine.low %v270_v57, %v274_v58  ;;  %v1774_v14 = vcombine.low %v271_v59, %v275_v60  ;;  %v240_v51 = vld [vmem:[#allocation5 + $0xd0] sm:$0xff]  ;;  %v241_v58 = vld [vmem:[#allocation5 + $0xd8] sm:$0xff] }
  0x7d   : > { %610 = vmatpush1.bf16.msra.mxu0 %v1718_v35  ;;  %651 = vmatpush1.bf16.msra.mxu1 %v1722_v36  ;;  %v1807_v50 = vcombine.high %v233_v41, %v237_v42  ;;  %v244_v57 = vld [vmem:[#allocation5 + $0xf0] sm:$0xff]  ;;  %v245_v59 = vld [vmem:[#allocation5 + $0xf8] sm:$0xff]  ;;  %v1812_v60 = vcombine.low %v232_v39, %v236_v40  ;;  %v1816_v61 = vcombine.low %v233_v41, %v237_v42 }
  0x7e   : > { %611 = vmatprep.subr.bf16.mxu0 %v1724_v37  ;;  %652 = vmatprep.subr.bf16.mxu1 %v1727_v38  ;;  %v1818_v3 = vcombine.high %v240_v51, %v244_v57  ;;  %v1821_v5 = vcombine.high %v241_v58, %v245_v59  ;;  %v252_v8 = vld [vmem:[#allocation5 + $0x130] sm:$0xff]  ;;  %v249_v12 = vld [vmem:[#allocation5 + $0x118] sm:$0xff]  ;;  %v1824_v23 = vcombine.low %v240_v51, %v244_v57 }
  0x7f   : > { %2043 = vst [vmem:[#allocation12_spill] sm:$0xff] %v1812_v60  ;;  %2044 = vst [vmem:[#allocation13_spill] sm:$0xff] %v1816_v61  ;;  %v253_v18 = vld [vmem:[#allocation5 + $0x138] sm:$0xff]  ;;  %v1828_v25 = vcombine.low %v241_v58, %v245_v59  ;;  %v1830_v26 = vcombine.high %v248_v7, %v252_v8  ;;  %v256_v40 = vld [vmem:[#allocation5 + $0x150] sm:$0xff]  ;;  %v1836_v51 = vcombine.low %v248_v7, %v252_v8 }
  0x80   : > { %2045 = vst [vmem:[#allocation14_spill] sm:$0xff] %v1818_v3  ;;  %2046 = vst [vmem:[#allocation15_spill] sm:$0xff] %v1821_v5  ;;  %v1833_v39 = vcombine.high %v249_v12, %v253_v18  ;;  %v260_v41 = vld [vmem:[#allocation5 + $0x170] sm:$0xff]  ;;  %v257_v42 = vld [vmem:[#allocation5 + $0x158] sm:$0xff]  ;;  %v1840_v57 = vcombine.low %v249_v12, %v253_v18 }
  0x81   : > { %612 = vmatpush1.bf16.msra.mxu0 %v1730_v43  ;;  %653 = vmatpush1.bf16.msra.mxu1 %v1735_v45  ;;  %2047 = vst [vmem:[#allocation16_spill] sm:$0xff] %v1824_v23  ;;  %2048 = vst [vmem:[#allocation17_spill] sm:$0xff] %v1828_v25  ;;  %v1842_v58 = vcombine.high %v256_v40, %v260_v41  ;;  %v1848_v7 = vcombine.low %v256_v40, %v260_v41 }
  0x82   : > { %613 = vmatprep.subr.bf16.mxu0 %v1737_v46  ;;  %654 = vmatprep.subr.bf16.mxu1 %v1740_v47  ;;  %2049 = vst [vmem:[#allocation18_spill] sm:$0xff] %v1830_v26  ;;  %2050 = vst [vmem:[#allocation19_spill] sm:$0xff] %v1833_v39 }
  0x85   : > { %614 = vmatpush1.bf16.msra.mxu0 %v1745_v53  ;;  %655 = vmatpush1.bf16.msra.mxu1 %v1749_v54 }
  0x86   : > { %615 = vmatprep.subr.bf16.mxu0 %v1751_v55  ;;  %656 = vmatprep.subr.bf16.mxu1 %v1754_v56 }
  0x89   : > { %616 = vmatpush1.bf16.msra.mxu0 %v1758_v62  ;;  %657 = vmatpush1.bf16.msra.mxu1 %v1762_v63 }
  0x8a   : > { %617 = vmatprep.subr.bf16.mxu0 %v1764_v1  ;;  %658 = vmatprep.subr.bf16.mxu1 %v1767_v2 }
  0x8d   : > { %618 = vmatpush1.bf16.msra.mxu0 %v1770_v13  ;;  %659 = vmatpush1.bf16.msra.mxu1 %v1774_v14 }
  0x8e   : > { %685 = vmatprep.subr.bf16.mxu0 %v1776_v16  ;;  %726 = vmatprep.subr.bf16.mxu1 %v1779_v17 }
  0x90   : > { %636 = vmatmul.mubr.bf16.vlgmr.msra.gmra.mrb[0].mxu0 %v1781_v24  ;;  %677 = vmatmul.mubr.bf16.vlgmr.msra.gmra.mrb[0].mxu1 %v1781_v24 }
  0x91   : > { %686 = vmatpush1.bf16.msra.mxu0 %v1784_v31  ;;  %727 = vmatpush1.bf16.msra.mxu1 %v1788_v32 }
  0x92   : > { %687 = vmatprep.subr.bf16.mxu0 %v1790_v33  ;;  %728 = vmatprep.subr.bf16.mxu1 %v1793_v34 }
  0x93   : > { %717 = vmatprep.mubr.bf16.mxu0 %v2022_v0  ;;  %758 = vmatprep.mubr.bf16.mxu1 %v2022_v0  ;;  %v261_v0 = vld [vmem:[#allocation5 + $0x178] sm:$0xff] }
  0x94   : > { %v1845_v59 = vcombine.high %v257_v42, %v261_v0  ;;  %v1852_v8 = vcombine.low %v257_v42, %v261_v0 }
  0x95   : > { %688 = vmatpush1.bf16.msra.mxu0 %v1798_v44  ;;  %729 = vmatpush1.bf16.msra.mxu1 %v1802_v48 }
  0x96   : > { %689 = vmatprep.subr.bf16.mxu0 %v1804_v49  ;;  %730 = vmatprep.subr.bf16.mxu1 %v1807_v50  ;;  %2051 = vst [vmem:[#allocation20_spill] sm:$0xff] %v1845_v59 }
  0x99   : > { %690 = vmatpush1.bf16.msra.mxu0 %v1812_v60  ;;  %731 = vmatpush1.bf16.msra.mxu1 %v1816_v61  ;;  %v265_v61 = vld [vmem:[#allocation5 + $0x198] sm:$0xff] }
  0x9a   : > { %691 = vmatprep.subr.bf16.mxu0 %v1818_v3  ;;  %732 = vmatprep.subr.bf16.mxu1 %v1821_v5  ;;  %v264_v5 = vld [vmem:[#allocation5 + $0x190] sm:$0xff]  ;;  %v269_v60 = vld [vmem:[#allocation5 + $0x1b8] sm:$0xff] }
  0x9b   : > { %v268_v3 = vld [vmem:[#allocation5 + $0x1b0] sm:$0xff]  ;;  %v1857_v18 = vcombine.high %v265_v61, %v269_v60  ;;  %v1864_v0 = vcombine.low %v265_v61, %v269_v60  ;;  %v2052_v60 = vmov 0  }
  0x9c   : > { %v1854_v12 = vcombine.high %v264_v5, %v268_v3  ;;  %v1860_v40 = vcombine.low %v264_v5, %v268_v3 }
  0x9d   : > { %692 = vmatpush1.bf16.msra.mxu0 %v1824_v23  ;;  %733 = vmatpush1.bf16.msra.mxu1 %v1828_v25  ;;  %v273_v25 = vld [vmem:[#allocation5 + $0x1d8] sm:$0xff] }
  0x9e   : > { %693 = vmatprep.subr.bf16.mxu0 %v1830_v26  ;;  %734 = vmatprep.subr.bf16.mxu1 %v1833_v39  ;;  %v272_v39 = vld [vmem:[#allocation5 + $0x1d0] sm:$0xff]  ;;  %v277_v23 = vld [vmem:[#allocation5 + $0x1f8] sm:$0xff] }
  0x9f   : > { %v276_v26 = vld [vmem:[#allocation5 + $0x1f0] sm:$0xff]  ;;  %v1869_v42 = vcombine.high %v273_v25, %v277_v23  ;;  %v1876_v3 = vcombine.low %v273_v25, %v277_v23 }
  0xa0   : > { %v1866_v41 = vcombine.high %v272_v39, %v276_v26 }
  0xa1   : > { %694 = vmatpush1.bf16.msra.mxu0 %v1836_v51  ;;  %735 = vmatpush1.bf16.msra.mxu1 %v1840_v57 }
  0xa2   : > { %695 = vmatprep.subr.bf16.mxu0 %v1842_v58  ;;  %736 = vmatprep.subr.bf16.mxu1 %v1845_v59  ;;  %v1872_v59 = vcombine.low %v272_v39, %v276_v26 }
  0xa5   : > { %696 = vmatpush1.bf16.msra.mxu0 %v1848_v7  ;;  %737 = vmatpush1.bf16.msra.mxu1 %v1852_v8 }
  0xa6   : > { %697 = vmatprep.subr.bf16.mxu0 %v1854_v12  ;;  %738 = vmatprep.subr.bf16.mxu1 %v1857_v18 }
  0xa9   : > { %698 = vmatpush1.bf16.msra.mxu0 %v1860_v40  ;;  %739 = vmatpush1.bf16.msra.mxu1 %v1864_v0 }
  0xaa   : > { %699 = vmatprep.subr.bf16.mxu0 %v1866_v41  ;;  %740 = vmatprep.subr.bf16.mxu1 %v1869_v42 }
  0xad   : > { %700 = vmatpush1.bf16.msra.mxu0 %v1872_v59  ;;  %741 = vmatpush1.bf16.msra.mxu1 %v1876_v3 }
  0xae   : > { %767 = vmatprep.subr.bf16.mxu0 %v1679_v4  ;;  %808 = vmatprep.subr.bf16.mxu1 %v1683_v9  ;;  %v2053_v4 = vld [vmem:[#allocation12_spill] sm:$0xff]  ;;  %v2055_v9 = vld [vmem:[#allocation14_spill] sm:$0xff] }
  0xb0   : > { %718 = vmatmul.mubr.bf16.vlgmr.msra.gmra.mrb[4].mxu0 %v1781_v24  ;;  %759 = vmatmul.mubr.bf16.vlgmr.msra.gmra.mrb[4].mxu1 %v1781_v24 }
  0xb1   : > { %768 = vmatpush1.bf16.msra.mxu0 %v1681_v6  ;;  %809 = vmatpush1.bf16.msra.mxu1 %v1685_v10  ;;  %v2054_v6 = vld [vmem:[#allocation13_spill] sm:$0xff]  ;;  %v2056_v10 = vld [vmem:[#allocation15_spill] sm:$0xff] }
  0xb2   : > { %769 = vmatprep.subr.bf16.mxu0 %v1687_v11  ;;  %810 = vmatprep.subr.bf16.mxu1 %v1690_v15  ;;  %v2057_v11 = vld [vmem:[#allocation16_spill] sm:$0xff]  ;;  %v2058_v15 = vld [vmem:[#allocation17_spill] sm:$0xff] }
  0xb3   : > { %799 = vmatprep.mubr.bf16.mxu0 %v2052_v60  ;;  %840 = vmatprep.mubr.bf16.mxu1 %v2052_v60 }
  0xb5   : > { %770 = vmatpush1.bf16.msra.mxu0 %v1694_v19  ;;  %811 = vmatpush1.bf16.msra.mxu1 %v1698_v20  ;;  %v2059_v19 = vld [vmem:[#allocation18_spill] sm:$0xff]  ;;  %v2060_v20 = vld [vmem:[#allocation19_spill] sm:$0xff] }
  0xb6   : > { %771 = vmatprep.subr.bf16.mxu0 %v1700_v21  ;;  %812 = vmatprep.subr.bf16.mxu1 %v1703_v22  ;;  %v2061_v21 = vld [vmem:[#allocation20_spill] sm:$0xff]  ;;  %v933_v22 = vlaneseq }
  0xb9   : > { %772 = vmatpush1.bf16.msra.mxu0 %v1706_v27  ;;  %813 = vmatpush1.bf16.msra.mxu1 %v1710_v28  ;;  %v934_v27 = vshrl.u32 %v933_v22, 7 }
  0xba   : > { %773 = vmatprep.subr.bf16.mxu0 %v1712_v29  ;;  %814 = vmatprep.subr.bf16.mxu1 %v1715_v30  ;;  %v931_v29 = vld [vmem:[#allocation7] sm:$0xff] }
  0xbb   : > { %v935_v28 = vsub.s32 0, %v934_v27  ;;  %v943_v30 = vsub.s32 2, %v934_v27  ;;  %v951_v26 = vsub.s32 4, %v934_v27  ;;  %v959_v39 = vsub.s32 6, %v934_v27 }
  0xbd   : > { %774 = vmatpush1.bf16.msra.mxu0 %v1718_v35  ;;  %815 = vmatpush1.bf16.msra.mxu1 %v1722_v36  ;;  %v939_v35 = vsub.s32 1, %v934_v27  ;;  %v947_v36 = vsub.s32 3, %v934_v27 }
  0xbe   : > { %775 = vmatprep.subr.bf16.mxu0 %v1724_v37  ;;  %816 = vmatprep.subr.bf16.mxu1 %v1727_v38  ;;  %v936_v37 = vrot.slane %v931_v29, %v935_v28  ;;  %v944_v38 = vrot.slane %v931_v29, %v943_v30 }
  0xc1   : > { %776 = vmatpush1.bf16.msra.mxu0 %v1730_v43  ;;  %817 = vmatpush1.bf16.msra.mxu1 %v1735_v45  ;;  %v940_v43 = vrot.slane %v931_v29, %v939_v35  ;;  %v948_v45 = vrot.slane %v931_v29, %v947_v36 }
  0xc2   : > { %777 = vmatprep.subr.bf16.mxu0 %v1737_v46  ;;  %818 = vmatprep.subr.bf16.mxu1 %v1740_v47 }
  0xc5   : > { %778 = vmatpush1.bf16.msra.mxu0 %v1745_v53  ;;  %819 = vmatpush1.bf16.msra.mxu1 %v1749_v54 }
  0xc6   : > { %779 = vmatprep.subr.bf16.mxu0 %v1751_v55  ;;  %820 = vmatprep.subr.bf16.mxu1 %v1754_v56 }
  0xc9   : > { %780 = vmatpush1.bf16.msra.mxu0 %v1758_v62  ;;  %821 = vmatpush1.bf16.msra.mxu1 %v1762_v63 }
  0xca   : > { %781 = vmatprep.subr.bf16.mxu0 %v1764_v1  ;;  %822 = vmatprep.subr.bf16.mxu1 %v1767_v2 }
  0xcd   : > { %782 = vmatpush1.bf16.msra.mxu0 %v1770_v13  ;;  %823 = vmatpush1.bf16.msra.mxu1 %v1774_v14 }
  0xce   : > { %849 = vmatprep.subr.bf16.mxu0 %v1776_v16  ;;  %890 = vmatprep.subr.bf16.mxu1 %v1779_v17 }
  0xd0   : > { %800 = vmatmul.mubr.bf16.vlgmr.msra.gmra.mrb[0].mxu0 %v1742_v52  ;;  %841 = vmatmul.mubr.bf16.vlgmr.msra.gmra.mrb[0].mxu1 %v1742_v52 }
  0xd1   : > { %850 = vmatpush1.bf16.msra.mxu0 %v1784_v31  ;;  %891 = vmatpush1.bf16.msra.mxu1 %v1788_v32 }
  0xd2   : > { %851 = vmatprep.subr.bf16.mxu0 %v1790_v33  ;;  %892 = vmatprep.subr.bf16.mxu1 %v1793_v34 }
  0xd3   : > { %881 = vmatprep.mubr.bf16.mxu0 %v2052_v60  ;;  %922 = vmatprep.mubr.bf16.mxu1 %v2052_v60 }
  0xd5   : > { %852 = vmatpush1.bf16.msra.mxu0 %v1798_v44  ;;  %893 = vmatpush1.bf16.msra.mxu1 %v1802_v48 }
  0xd6   : > { %853 = vmatprep.subr.bf16.mxu0 %v1804_v49  ;;  %894 = vmatprep.subr.bf16.mxu1 %v1807_v50 }
  0xd9   : > { %854 = vmatpush1.bf16.msra.mxu0 %v2053_v4  ;;  %895 = vmatpush1.bf16.msra.mxu1 %v2054_v6 }
  0xda   : > { %855 = vmatprep.subr.bf16.mxu0 %v2055_v9  ;;  %896 = vmatprep.subr.bf16.mxu1 %v2056_v10 }
  0xdd   : > { %856 = vmatpush1.bf16.msra.mxu0 %v2057_v11  ;;  %897 = vmatpush1.bf16.msra.mxu1 %v2058_v15 }
  0xde   : > { %857 = vmatprep.subr.bf16.mxu0 %v2059_v19  ;;  %898 = vmatprep.subr.bf16.mxu1 %v2060_v20 }
  0xe1   : > { %858 = vmatpush1.bf16.msra.mxu0 %v1836_v51  ;;  %899 = vmatpush1.bf16.msra.mxu1 %v1840_v57  ;;  %v955_v51 = vsub.s32 5, %v934_v27  ;;  %v963_v57 = vsub.s32 7, %v934_v27 }
  0xe2   : > { %859 = vmatprep.subr.bf16.mxu0 %v1842_v58  ;;  %900 = vmatprep.subr.bf16.mxu1 %v2061_v21  ;;  %v952_v58 = vrot.slane %v931_v29, %v951_v26 }
  0xe5   : > { %860 = vmatpush1.bf16.msra.mxu0 %v1848_v7  ;;  %901 = vmatpush1.bf16.msra.mxu1 %v1852_v8  ;;  %v956_v7 = vrot.slane %v931_v29, %v955_v51  ;;  %v964_v8 = vrot.slane %v931_v29, %v963_v57 }
  0xe6   : > { %861 = vmatprep.subr.bf16.mxu0 %v1854_v12  ;;  %902 = vmatprep.subr.bf16.mxu1 %v1857_v18 }
  0xe9   : > { %862 = vmatpush1.bf16.msra.mxu0 %v1860_v40  ;;  %903 = vmatpush1.bf16.msra.mxu1 %v1864_v0 }
  0xea   : > { %863 = vmatprep.subr.bf16.mxu0 %v1866_v41  ;;  %904 = vmatprep.subr.bf16.mxu1 %v1869_v42 }
  0xed   : > { %864 = vmatpush1.bf16.msra.mxu0 %v1872_v59  ;;  %905 = vmatpush1.bf16.msra.mxu1 %v1876_v3  ;;  %v960_v59 = vrot.slane %v931_v29, %v959_v39 }
  0xf0   : > { %882 = vmatmul.mubr.bf16.vlgmr.msra.gmra.mrb[4].mxu0 %v1742_v52  ;;  %923 = vmatmul.mubr.bf16.vlgmr.msra.gmra.mrb[4].mxu1 %v1742_v52 }
 0x1a3   : > { %v801_v46 = vpop.f32.mrb[0].mxu0  ;;  %v842_v53 = vpop.f32.mrb[0].mxu1 }
 0x1a4   : > { %v973_v47 = vsub.f32 %v801_v46, %v936_v37  ;;  %v803_v54 = vpop.f32.mrb[1].mxu0  ;;  %v975_v55 = vsub.f32 %v842_v53, %v944_v38  ;;  %v844_v62 = vpop.f32.mrb[1].mxu1 }
 0x1a5   : > { %v974_v56 = vsub.f32 %v803_v54, %v940_v43  ;;  %v805_v63 = vpop.f32.mrb[2].mxu0  ;;  %v976_v1 = vsub.f32 %v844_v62, %v948_v45  ;;  %v846_v2 = vpop.f32.mrb[2].mxu1 }
 0x1a6   : > { %v981_v52 = vmul.f32 %v973_v47, %v973_v47  ;;  %v806_v13 = vpop.f32.mrb[3].mxu0  ;;  %v983_v14 = vmul.f32 %v975_v55, %v975_v55  ;;  %v847_v17 = vpop.f32.mrb[3].mxu1 }
 0x1a7   : > { %v982_v16 = vmul.f32 %v974_v56, %v974_v56  ;;  %v984_v31 = vmul.f32 %v976_v1, %v976_v1 }
 0x1a8   : > { %v989_v24 = vmul.f32 -3.0625, %v981_v52  ;;  %v991_v32 = vmul.f32 -3.0625, %v983_v14 }
 0x1a9   : > { %v990_v33 = vmul.f32 -3.0625, %v982_v16  ;;  %v992_v44 = vmul.f32 -3.0625, %v984_v31 }
 0x1aa   : > { %v997_v34 = vmul.f32 1.442695, %v989_v24  ;;  %v1001_v48 = vmul.f32 1.442695, %v991_v32 }
 0x1ab   : > { %v999_v49 = vmul.f32 1.442695, %v990_v33  ;;  %v1003_v50 = vmul.f32 1.442695, %v992_v44 }
 0x1ac   : > { %1293 = vpow2.f32 %v997_v34 }
 0x1ad   : > { %1295 = vpow2.f32 %v1001_v48 }
 0x1ae   : > { %1297 = vpow2.f32 %v999_v49 }
 0x1af   : > { %1299 = vpow2.f32 %v1003_v50 }
 0x1b6   : > { %v1294_v61 = vpop.eup %1293 }
 0x1b7   : > { %v1296_v5 = vpop.eup %1295  ;;  %1013 = vst [vmem:[%s1956_s20] sm:$0xff] %v1294_v61 }
 0x1b8   : > { %v1298_v23 = vpop.eup %1297  ;;  %1015 = vst [vmem:[%s1956_s20 + $0x10] sm:$0xff] %v1296_v5 }
 0x1b9   : > { %v1300_v25 = vpop.eup %1299  ;;  %1014 = vst [vmem:[%s1956_s20 + $0x8] sm:$0xff] %v1298_v23 }
 0x1ba   : > { %1016 = vst [vmem:[%s1956_s20 + $0x18] sm:$0xff] %v1300_v25 }
 0x1c3   : > { %v883_v12 = vpop.f32.mrb[4].mxu0  ;;  %v924_v40 = vpop.f32.mrb[4].mxu1 }
 0x1c4   : > { %v977_v18 = vsub.f32 %v883_v12, %v952_v58  ;;  %v885_v0 = vpop.f32.mrb[5].mxu0  ;;  %v979_v41 = vsub.f32 %v924_v40, %v960_v59  ;;  %v926_v3 = vpop.f32.mrb[5].mxu1 }
 0x1c5   : > { %v978_v42 = vsub.f32 %v885_v0, %v956_v7  ;;  %v887_v60 = vpop.f32.mrb[6].mxu0  ;;  %v980_v6 = vsub.f32 %v926_v3, %v964_v8  ;;  %v928_v9 = vpop.f32.mrb[6].mxu1 }
 0x1c6   : > { %v985_v4 = vmul.f32 %v977_v18, %v977_v18  ;;  %v888_v10 = vpop.f32.mrb[7].mxu0  ;;  %v987_v11 = vmul.f32 %v979_v41, %v979_v41  ;;  %v929_v19 = vpop.f32.mrb[7].mxu1 }
 0x1c7   : > { %v986_v15 = vmul.f32 %v978_v42, %v978_v42  ;;  %v988_v21 = vmul.f32 %v980_v6, %v980_v6 }
 0x1c8   : > { %v993_v20 = vmul.f32 -3.0625, %v985_v4  ;;  %v995_v22 = vmul.f32 -3.0625, %v987_v11 }
 0x1c9   : > { %v994_v27 = vmul.f32 -3.0625, %v986_v15  ;;  %v996_v29 = vmul.f32 -3.0625, %v988_v21 }
 0x1ca   : > { %v1005_v28 = vmul.f32 1.442695, %v993_v20  ;;  %v1009_v30 = vmul.f32 1.442695, %v995_v22 }
 0x1cb   : > { %v1007_v35 = vmul.f32 1.442695, %v994_v27  ;;  %v1011_v36 = vmul.f32 1.442695, %v996_v29 }
 0x1cc   : > { %1301 = vpow2.f32 %v1005_v28 }
 0x1cd   : > { %1303 = vpow2.f32 %v1009_v30 }
 0x1ce   : > { %1305 = vpow2.f32 %v1007_v35 }
 0x1cf   : > { %1307 = vpow2.f32 %v1011_v36 }
 0x1d6   : > { %v1302_v37 = vpop.eup %1301 }
 0x1d7   : > { %v1304_v38 = vpop.eup %1303  ;;  %1017 = vst [vmem:[%s1956_s20 + $0x20] sm:$0xff] %v1302_v37 }
 0x1d8   : > { %v1306_v43 = vpop.eup %1305  ;;  %1019 = vst [vmem:[%s1956_s20 + $0x30] sm:$0xff] %v1304_v38 }
 0x1d9   : > { %v1308_v45 = vpop.eup %1307  ;;  %1018 = vst [vmem:[%s1956_s20 + $0x28] sm:$0xff] %v1306_v43 }
 0x1da   : > { %1020 = vst [vmem:[%s1956_s20 + $0x38] sm:$0xff] %v1308_v45 }
 0x1db   : > { %1408 = shalt.err (!%p1405_p2)
}
 0x1dc   : > { %s1409_s9 = scalar_lea.hbm %s1969_s29, 1024  ;;  %s1413_s11 = scalar_lea.hbm %s2018_s3, 2048 }
 0x1dd   : > { %p1410_p13 = scmp.ne.s32.totalorder %s1969_s29, %s1409_s9  ;;  %p1414_p4 = scmp.lt.u32.totalorder %s1969_s29, %s2018_s3 }
 0x1de   : > { %p1415_p5 = scmp.lt.u32.totalorder %s1413_s11, %s1409_s9  ;;  %p1417_p11 = scmp.lt.u32.totalorder %s1409_s9, %s1969_s29 }
 0x1df   : > { %p1411_p6 = pnand %p1410_p13, %p2062_p0 }
 0x1e0   : > { %p1416_p8 = por %p1415_p5, %p1414_p4 }
 0x1e1   : > { %p1412_p10 = pneg %p1411_p6 }
 0x1e2   : > { %p1418_p1 = por %p1417_p11, %p1416_p8 }
 0x1e4   : > { %p1419_p3 = pnand %p1418_p1, %p1412_p10 }
 0x1e6   : > { %1422 = shalt.err (!%p1419_p3)
}
 0x1e7   : > { %1233 = dma.vmem_to_hbm [thread:$0]  (%p2062_p0), %s1971_s24, 1024, %s1969_s29, %s1022_s16  }
 0x1e8 PF: > { %s1048_s22 = sand.u32 1, %s1453_s12   ;;  %p2063_p7 = scmp.ne.s32.totalorder %s2034_s19, 0 }
 0x1e9   : > { %p2064_p9 = scmp.ge.s32.totalorder %s1465_s15, 2  ;;  %s1049_s18 = scalar_lea.sflag [#allocation4], %s1048_s22 }
 0x1eb   : > { %p1247_p12 = pnand %p2064_p9, %p2063_p7 }
 0x1ed   : > { %1448 = dma.done.wait (!%p1247_p12), %s1049_s18, 1024  }
 0x1ee   : > { %1450 = vsyncadd (!%p1247_p12), %s1049_s18, 4294966272  ;;  %p17_p2 = scmp.ge.s32.totalorder %s1604_s4, 4   ;;  %s2065_s12 = smov %s1457_s13 }
 0x1ef   : > { %s2066_s13 = smov %s1461_s14  ;;  %s2067_s14 = smov %s1620_s7 }
 0x1f0   : > { %s2068_s15 = smov %s1604_s4  ;;  %19 = sbr.rel (!%p17_p2) target bundleno = 6 (0x6), region = 85 }
 0x1f7   :  { %1054 = vsyncpa [#allocation3], 1 }
 0x1f8   :  { %1056 = vsyncpa [#allocation3 + $0x1], 1 }
 0x1f9   :  { %1057 = vsyncpa [#allocation6], 1 }
 0x1fa   :  { %1058 = vsyncpa [#allocation4], 1 }
 0x1fb   :  { %1060 = vsyncpa [#allocation4 + $0x1], 1 }

</bundles_post_ra>
